<compile_context>
chip_gen: v6e
topology: v6e:2x2x1
jax: 0.10.0
libtpu: 0.0.40
codegen_flags: <defaults>
</compile_context>

<pallas_src>
import jax
import jax.numpy as jnp
from jax.experimental import pallas as pl
from jax.experimental.pallas import tpu as pltpu

IN_FEATURES = 4
HIDDEN = 64
LANES = 128            # lane-dense padded width for hidden / output dims
ONE_COL = HIDDEN       # column 64 carries a constant 1.0 (bias carrier)

# Parameter-slab row layout (all rows are 128 lanes wide, f32):
ROW_B1 = 0                      # row 0: b1 (cols 0:64) + 1.0 at col 64
ROW_W1 = 8                      # rows 8..11: w1 (4 x 64, zero-padded to 128)
ROW_W2 = 16                     # rows 16..143: W2 augmented (128 x 128)
ROW_W3 = ROW_W2 + LANES         # rows 144..271: W3 augmented (128 x 128)
TOTAL_ROWS = ROW_W3 + LANES     # 272


def _round_up(n, m):
    return ((n + m - 1) // m) * m


def qnet_kernel(x_ref, p_ref, o_ref):
    x = x_ref[...]                                            # (TB, 4) f32

    # ---- fc1 on the VPU: K=4 unrolled FMAs, bias folded into the init ----
    h = p_ref[ROW_B1:ROW_B1 + 1, :] + x[:, 0:1] * p_ref[ROW_W1:ROW_W1 + 1, :]
    for k in range(1, IN_FEATURES):
        h = h + x[:, k:k + 1] * p_ref[ROW_W1 + k:ROW_W1 + k + 1, :]
    h1 = jnp.maximum(h, 0.0)                                  # (TB, 128); col 64 == 1.0

    # ---- fc2 / fc3 on the MXU; b2/b3 folded in via the ones column ----
    h2 = jnp.dot(h1, p_ref[ROW_W2:ROW_W2 + LANES, :],
                 preferred_element_type=jnp.float32)
    h2 = jnp.maximum(h2, 0.0)                                 # col 64 stays 1.0
    out = jnp.dot(h2, p_ref[ROW_W3:ROW_W3 + LANES, :],
                  preferred_element_type=jnp.float32)
    o_ref[...] = out.astype(o_ref.dtype)                      # lane-dense (TB, 128) store


def pack_qnet_params(w1, b1, w2, b2, w3, b3):
    """Pack Linear params into one lane-aligned (272, 128) f32 slab.

    w* are (in_features, out_features) (torch weight transposed), b* are (out,).
    b2/b3 are folded into augmented weight matrices via a constant-1 column.
    """
    actions = w3.shape[1]
    slab = jnp.zeros((TOTAL_ROWS, LANES), jnp.float32)
    slab = slab.at[ROW_B1, :HIDDEN].set(b1)
    slab = slab.at[ROW_B1, ONE_COL].set(1.0)                   # bias carrier := 1
    slab = slab.at[ROW_W1:ROW_W1 + IN_FEATURES, :HIDDEN].set(w1)
    slab = slab.at[ROW_W2:ROW_W2 + HIDDEN, :HIDDEN].set(w2)
    slab = slab.at[ROW_W2 + ONE_COL, :HIDDEN].set(b2)          # fc2 bias row
    slab = slab.at[ROW_W2 + ONE_COL, ONE_COL].set(1.0)         # keep carrier alive
    slab = slab.at[ROW_W3:ROW_W3 + HIDDEN, :actions].set(w3)
    slab = slab.at[ROW_W3 + ONE_COL, :actions].set(b3)         # fc3 bias row
    return slab


def qnet_forward(x, param_slab, actions, *, block_b=512):
    """x: (B, 4) f32; param_slab: packed (272, 128) slab. Returns (B, actions)."""
    B = x.shape[0]
    tb = _round_up(min(block_b, max(B, 8)), 8)     # batch tile, multiple of 8
    bp = _round_up(B, tb)
    if bp != B:
        x = jnp.pad(x, ((0, bp - B), (0, 0)))
    grid = (bp // tb,)

    flops = 2 * bp * (IN_FEATURES * HIDDEN + HIDDEN * HIDDEN + HIDDEN * actions)
    bytes_accessed = (bp * IN_FEATURES + TOTAL_ROWS * LANES + bp * LANES) * 4

    out = pl.pallas_call(
        qnet_kernel,
        out_shape=jax.ShapeDtypeStruct((bp, LANES), jnp.float32),
        grid=grid,
        in_specs=[
            pl.BlockSpec((tb, IN_FEATURES), lambda i: (i, 0)),    # stream activations
            pl.BlockSpec((TOTAL_ROWS, LANES), lambda i: (0, 0)),  # weights stay resident
        ],
        out_specs=pl.BlockSpec((tb, LANES), lambda i: (i, 0)),
        compiler_params=pltpu.CompilerParams(
            dimension_semantics=("parallel",)),                   # shard batch over TCs (v7x)
        cost_estimate=pl.CostEstimate(
            flops=flops, transcendentals=0, bytes_accessed=bytes_accessed),
    )(x, param_slab)
    return out[:B, :actions]


def init_qnet_params(key, actions=2):
    """Mimics PyTorch nn.Linear default init: U[-1/sqrt(fan_in), +1/sqrt(fan_in)]."""
    def linear(k, fan_in, fan_out):
        kw, kb = jax.random.split(k)
        bound = 1.0 / (fan_in ** 0.5)
        w = jax.random.uniform(kw, (fan_in, fan_out), jnp.float32, -bound, bound)
        b = jax.random.uniform(kb, (fan_out,), jnp.float32, -bound, bound)
        return w, b

    k1, k2, k3 = jax.random.split(key, 3)
    w1, b1 = linear(k1, IN_FEATURES, HIDDEN)
    w2, b2 = linear(k2, HIDDEN, HIDDEN)
    w3, b3 = linear(k3, HIDDEN, actions)
    return {"w1": w1, "b1": b1, "w2": w2, "b2": b2, "w3": w3, "b3": b3}


def qnet_forward_ref(x, p):
    """Pure-JAX reference for correctness check."""
    h1 = jnp.maximum(x @ p["w1"] + p["b1"], 0.0)
    h2 = jnp.maximum(h1 @ p["w2"] + p["b2"], 0.0)
    return h2 @ p["w3"] + p["b3"]


# TODO(synk): sample_action()'s host-side epsilon-greedy (python random + argmax)
# is control flow around the forward pass, not part of the kernel.

if __name__ == "__main__":
    key = jax.random.PRNGKey(0)
    kp, kx = jax.random.split(key)

    actions = 2
    batch = 8
    raw_params = init_qnet_params(kp, actions=actions)
    param_slab = pack_qnet_params(**raw_params)
    x = jax.random.normal(kx, (batch, IN_FEATURES), jnp.float32)  # CartPole obs (B, 4)

    out = qnet_forward(x, param_slab, actions)
    out = jax.block_until_ready(out)

    ref = qnet_forward_ref(x, raw_params)
    assert out.shape == (batch, actions), out.shape
    assert jnp.allclose(out, ref, atol=1e-4, rtol=1e-4), "mismatch vs reference"

    print("KERNEL_OK")
</pallas_src>

<mosaic_0001>
module attributes {stable_mosaic.version = 11 : i64} {
  func.func @qnet_kernel(%arg0: i32, %arg1: memref<8x4xf32, #tpu.memory_space<vmem>>, %arg2: memref<272x128xf32, #tpu.memory_space<vmem>>, %arg3: memref<8x128xf32, #tpu.memory_space<vmem>>) attributes {dimension_semantics = [#tpu.dimension_semantics<parallel>], iteration_bounds = array<i64: 1>, scalar_prefetch = 0 : i64, scratch_operands = 0 : i64, tpu.core_type = #tpu.core_type<tc>, window_params = [{transform_indices = @transform_0, window_bounds = array<i64: 8, 4>}, {pipeline_mode = #tpu.pipeline_mode<synchronous>, transform_indices = @transform_1, window_bounds = array<i64: 272, 128>}, {transform_indices = @transform_2, window_bounds = array<i64: 8, 128>}]} {
    %c0 = arith.constant 0 : index
    %c0_0 = arith.constant 0 : index
    %0 = vector.load %arg1[%c0, %c0_0] : memref<8x4xf32, #tpu.memory_space<vmem>>, vector<8x4xf32>
    %c0_1 = arith.constant 0 : index
    %c0_2 = arith.constant 0 : index
    %1 = vector.load %arg2[%c0_1, %c0_2] : memref<272x128xf32, #tpu.memory_space<vmem>>, vector<1x128xf32>
    %2 = vector.extract_strided_slice %0 {offsets = [0, 0], sizes = [8, 1], strides = [1, 1]} : vector<8x4xf32> to vector<8x1xf32>
    %c8 = arith.constant 8 : index
    %c0_3 = arith.constant 0 : index
    %3 = vector.load %arg2[%c8, %c0_3] : memref<272x128xf32, #tpu.memory_space<vmem>>, vector<1x128xf32>
    %4 = vector.broadcast %2 : vector<8x1xf32> to vector<8x128xf32>
    %5 = vector.broadcast %3 : vector<1x128xf32> to vector<8x128xf32>
    %6 = arith.mulf %4, %5 : vector<8x128xf32>
    %7 = vector.broadcast %1 : vector<1x128xf32> to vector<8x128xf32>
    %8 = arith.addf %7, %6 : vector<8x128xf32>
    %9 = vector.extract_strided_slice %0 {offsets = [0, 1], sizes = [8, 1], strides = [1, 1]} : vector<8x4xf32> to vector<8x1xf32>
    %c9 = arith.constant 9 : index
    %c0_4 = arith.constant 0 : index
    %10 = vector.load %arg2[%c9, %c0_4] : memref<272x128xf32, #tpu.memory_space<vmem>>, vector<1x128xf32>
    %11 = vector.broadcast %9 : vector<8x1xf32> to vector<8x128xf32>
    %12 = vector.broadcast %10 : vector<1x128xf32> to vector<8x128xf32>
    %13 = arith.mulf %11, %12 : vector<8x128xf32>
    %14 = arith.addf %8, %13 : vector<8x128xf32>
    %15 = vector.extract_strided_slice %0 {offsets = [0, 2], sizes = [8, 1], strides = [1, 1]} : vector<8x4xf32> to vector<8x1xf32>
    %c10 = arith.constant 10 : index
    %c0_5 = arith.constant 0 : index
    %16 = vector.load %arg2[%c10, %c0_5] : memref<272x128xf32, #tpu.memory_space<vmem>>, vector<1x128xf32>
    %17 = vector.broadcast %15 : vector<8x1xf32> to vector<8x128xf32>
    %18 = vector.broadcast %16 : vector<1x128xf32> to vector<8x128xf32>
    %19 = arith.mulf %17, %18 : vector<8x128xf32>
    %20 = arith.addf %14, %19 : vector<8x128xf32>
    %21 = vector.extract_strided_slice %0 {offsets = [0, 3], sizes = [8, 1], strides = [1, 1]} : vector<8x4xf32> to vector<8x1xf32>
    %c11 = arith.constant 11 : index
    %c0_6 = arith.constant 0 : index
    %22 = vector.load %arg2[%c11, %c0_6] : memref<272x128xf32, #tpu.memory_space<vmem>>, vector<1x128xf32>
    %23 = vector.broadcast %21 : vector<8x1xf32> to vector<8x128xf32>
    %24 = vector.broadcast %22 : vector<1x128xf32> to vector<8x128xf32>
    %25 = arith.mulf %23, %24 : vector<8x128xf32>
    %26 = arith.addf %20, %25 : vector<8x128xf32>
    %cst = arith.constant 0.000000e+00 : f32
    %27 = vector.broadcast %cst : f32 to vector<8x128xf32>
    %28 = arith.maximumf %26, %27 : vector<8x128xf32>
    %c16 = arith.constant 16 : index
    %c0_7 = arith.constant 0 : index
    %29 = vector.load %arg2[%c16, %c0_7] : memref<272x128xf32, #tpu.memory_space<vmem>>, vector<128x128xf32>
    %cst_8 = arith.constant dense<0.000000e+00> : vector<8x128xf32>
    %30 = tpu.matmul %28, %29, %cst_8 {dimension_numbers = #tpu.dot_dimension_numbers<[1], [0], [0], [1], [0, 0, 1, 1], [], []>} : vector<8x128xf32>, vector<128x128xf32>, vector<8x128xf32> -> vector<8x128xf32>
    %cst_9 = arith.constant 0.000000e+00 : f32
    %31 = vector.broadcast %cst_9 : f32 to vector<8x128xf32>
    %32 = arith.maximumf %30, %31 : vector<8x128xf32>
    %c144 = arith.constant 144 : index
    %c0_10 = arith.constant 0 : index
    %33 = vector.load %arg2[%c144, %c0_10] : memref<272x128xf32, #tpu.memory_space<vmem>>, vector<128x128xf32>
    %cst_11 = arith.constant dense<0.000000e+00> : vector<8x128xf32>
    %34 = tpu.matmul %32, %33, %cst_11 {dimension_numbers = #tpu.dot_dimension_numbers<[1], [0], [0], [1], [0, 0, 1, 1], [], []>} : vector<8x128xf32>, vector<128x128xf32>, vector<8x128xf32> -> vector<8x128xf32>
    %c0_12 = arith.constant 0 : index
    %c0_13 = arith.constant 0 : index
    %35 = vector.load %arg3[%c0_12, %c0_13] : memref<8x128xf32, #tpu.memory_space<vmem>>, vector<8x128xf32>
    tpu.vector_store %arg3[%c0_12, %c0_13], %34 {strides = array<i32>} : memref<8x128xf32, #tpu.memory_space<vmem>>, vector<8x128xf32>,
    return
  }
  func.func @transform_0(%arg0: i32) -> (i32, i32) {
    %c0_i32 = arith.constant 0 : i32
    %c0_i32_0 = arith.constant 0 : i32
    return %arg0, %c0_i32 : i32, i32
  }
  func.func @transform_1(%arg0: i32) -> (i32, i32) {
    %c0_i32 = arith.constant 0 : i32
    %c0_i32_0 = arith.constant 0 : i32
    %c0_i32_1 = arith.constant 0 : i32
    return %c0_i32, %c0_i32_0 : i32, i32
  }
  func.func @transform_2(%arg0: i32) -> (i32, i32) {
    %c0_i32 = arith.constant 0 : i32
    %c0_i32_0 = arith.constant 0 : i32
    return %arg0, %c0_i32 : i32, i32
  }
}

</mosaic_0001>

<bundles_post_ra>
// kernel: tpu_custom_call.1
= control target key start
LH: loop header
LB: loop body
LE: loop exit
PB: predicated region body
PF: predicated region fallthrough
CT: control target
= control target key end

     0   :  { %7 = vsyncpa [#allocation3], 0  ;;  %s503_s0 = inlined_call_operand.vmem [shape: f32[8,4], index: 0, kind: input, shape index: {}]   ;;  %s504_s1 = inlined_call_operand.hbm [shape: f32[272,128], index: 1, kind: input, shape index: {}]   ;;  %s505_s2 = inlined_call_operand.hbm [shape: f32[8,128], index: 2, kind: output, shape index: {}]  }
   0x1   :  { %8 = vsyncpa [#allocation4], 0  ;;  %s435_s9 = smov [#allocation2]  }
   0x2   :  { %s16_s10 = sshll.u32 %s435_s9, 4  ;;  %s17_s10 = int_to_ptr.vmem [resolvable:$true] %s16_s10 }
   0x3   :  { %s399_s11 = scalar_lea.vmem %s17_s10, 4352  ;;  %p404_p1 = scmp.lt.s32.totalorder %s17_s10, %s17_s10 }
   0x4   :  { %p400_p0 = scmp.ne.s32.totalorder %s17_s10, %s399_s11  ;;  %p405_p2 = scmp.lt.s32.totalorder %s399_s11, %s399_s11 }
   0x6   :  { %p406_p3 = por %p405_p2, %p404_p1 }
   0x8   :  { %p407_p4 = pnand %p406_p3, %p400_p0 }
   0xa   :  { %410 = shalt.err (!%p407_p4)
}
   0xb   :  { %s436_s12 = smov 128   ;;  %s437_s13 = smov 8  }
   0xc   :  { %22 = dma.hbm_to_vmem [thread:$0]  %s504_s1, 4352, %s17_s10, [#allocation3], %s436_s12, %s436_s12, %s437_s13  }
   0xd   :  { %431 = dma.done.wait [#allocation3], 4352  }
   0xe   :  { %432 = vsyncadd [#allocation3], 4294962944  ;;  %v438_v0 = vmov 0   ;;  %v439_v1 = vmov 2   ;;  %v440_v2 = vmov 0.0   ;;  %v26_v3 = vld [vmem:[%s503_s0] sm:$0xff] }
   0xf   :  { %386 = vset.pattern.permute.xlu0 %v438_v0  ;;  %388 = vset.pattern.permute.xlu1 %v439_v1  ;;  %v93_v4 = vld [vmem:[#allocation2 + $0x88] sm:$0xff]  ;;  %v92_v5 = vld [vmem:[#allocation2 + $0x80] sm:$0xff]  ;;  %v441_v6 = vmov 1   ;;  %v442_v7 = vmov 3   ;;  %v91_v8 = vld [vmem:[#allocation2 + $0x78] sm:$0xff]  ;;  %vm443_vm0 = vmmov 0  }
  0x10   :  { %306 = vmatprep.subr.mxu0 %v440_v2  ;;  %341 = vmatprep.subr.mxu1 %v440_v2  ;;  %v90_v9 = vld [vmem:[#allocation2 + $0x70] sm:$0xff]  ;;  %v89_v10 = vld [vmem:[#allocation2 + $0x68] sm:$0xff]  ;;  %v88_v11 = vld [vmem:[#allocation2 + $0x60] sm:$0xff]  ;;  %s444_s0 = smov [#allocation5]  }
  0x11   :  { %31 = vperm.xlu0 %386, %v26_v3   ;;  %57 = vperm.xlu1 %388, %v26_v3   ;;  %v180_v12 = vld [vmem:[#allocation2 + $0x108] sm:$0xff]  ;;  %v179_v13 = vld [vmem:[#allocation2 + $0x100] sm:$0xff]  ;;  %v87_v14 = vld [vmem:[#allocation2 + $0x58] sm:$0xff]  ;;  %s258_s1 = sshll.u32 %s444_s0, 4  ;;  %s259_s1 = int_to_ptr.vmem [resolvable:$true] %s258_s1 }
  0x12   :  { %307 = vmatpush3.msra.mxu0 %v93_v4  ;;  %338 = vmatprep.mubr.msk.f32.mxu0 %vm443_vm0, %v440_v2  ;;  %v178_v15 = vld [vmem:[#allocation2 + $0xf8] sm:$0xff]  ;;  %v86_v16 = vld [vmem:[#allocation2 + $0x50] sm:$0xff]  ;;  %v85_v18 = vld [vmem:[#allocation2 + $0x48] sm:$0xff]  ;;  %s411_s18 = scalar_lea.vmem %s259_s1, 128  ;;  %p416_p6 = scmp.lt.s32.totalorder %s259_s1, %s259_s1 }
  0x13   :  { %308 = vmatprep.subr.mxu0 %v440_v2  ;;  %373 = vmatprep.mubr.msk.f32.mxu1 %vm443_vm0, %v440_v2  ;;  %v177_v17 = vld [vmem:[#allocation2 + $0xf0] sm:$0xff]  ;;  %v176_v19 = vld [vmem:[#allocation2 + $0xe8] sm:$0xff]  ;;  %v84_v20 = vld [vmem:[#allocation2 + $0x40] sm:$0xff]  ;;  %p412_p5 = scmp.ne.s32.totalorder %s259_s1, %s411_s18  ;;  %p417_p7 = scmp.lt.s32.totalorder %s411_s18, %s411_s18 }
  0x14   :  { %309 = vmatpush3.msra.mxu0 %v92_v5  ;;  %342 = vmatpush3.msra.mxu1 %v180_v12  ;;  %v175_v21 = vld [vmem:[#allocation2 + $0xe0] sm:$0xff]  ;;  %v83_v22 = vld [vmem:[#allocation2 + $0x38] sm:$0xff]  ;;  %v82_v24 = vld [vmem:[#allocation2 + $0x30] sm:$0xff] }
  0x15   :  { %387 = vset.pattern.permute.xlu0 %v441_v6  ;;  %389 = vset.pattern.permute.xlu1 %v442_v7  ;;  %v174_v23 = vld [vmem:[#allocation2 + $0xd8] sm:$0xff]  ;;  %v173_v25 = vld [vmem:[#allocation2 + $0xd0] sm:$0xff]  ;;  %v81_v26 = vld [vmem:[#allocation2 + $0x28] sm:$0xff]  ;;  %p418_p8 = por %p417_p7, %p416_p6 }
  0x16   :  { %46 = vperm.xlu0 %387, %v26_v3   ;;  %68 = vperm.xlu1 %389, %v26_v3   ;;  %v172_v27 = vld [vmem:[#allocation2 + $0xc8] sm:$0xff]  ;;  %v80_v28 = vld [vmem:[#allocation2 + $0x20] sm:$0xff]  ;;  %v79_v30 = vld [vmem:[#allocation2 + $0x18] sm:$0xff] }
  0x17   :  { %310 = vmatprep.subr.mxu0 %v440_v2  ;;  %343 = vmatprep.subr.mxu1 %v440_v2  ;;  %v171_v29 = vld [vmem:[#allocation2 + $0xc0] sm:$0xff]  ;;  %v170_v31 = vld [vmem:[#allocation2 + $0xb8] sm:$0xff]  ;;  %v78_v32 = vld [vmem:[#allocation2 + $0x10] sm:$0xff]  ;;  %p419_p9 = pnand %p418_p8, %p412_p5 }
  0x18   :  { %311 = vmatpush3.msra.mxu0 %v91_v8  ;;  %344 = vmatpush3.msra.mxu1 %v179_v13  ;;  %v169_v33 = vld [vmem:[#allocation2 + $0xb0] sm:$0xff]  ;;  %v168_v34 = vld [vmem:[#allocation2 + $0xa8] sm:$0xff]  ;;  %v167_v35 = vld [vmem:[#allocation2 + $0xa0] sm:$0xff] }
  0x19   :  { %312 = vmatprep.subr.mxu0 %v440_v2  ;;  %345 = vmatprep.subr.mxu1 %v440_v2  ;;  %v267_v36 = vld [vmem:[#allocation2 + $0x8] ss:$0 sm:$0xff]  ;;  %v268_v40 = vld [vmem:[#allocation2] ss:$0 sm:$0xff]  ;;  %v269_v41 = vld [vmem:[#allocation2 + $0x9] ss:$0 sm:$0xff] }
  0x1a   :  { %313 = vmatpush3.msra.mxu0 %v90_v9  ;;  %390 = vset.pattern.permute.xlu0 %v442_v7  ;;  %v270_v42 = vld [vmem:[#allocation2 + $0xa] ss:$0 sm:$0xff]  ;;  %v271_v44 = vld [vmem:[#allocation2 + $0xb] ss:$0 sm:$0xff]  ;;  %v166_v54 = vld [vmem:[#allocation2 + $0x98] sm:$0xff] }
  0x1b   :  { %314 = vmatprep.subr.mxu0 %v440_v2  ;;  %346 = vmatpush3.msra.mxu1 %v178_v15  ;;  %v165_v55 = vld [vmem:[#allocation2 + $0x90] sm:$0xff] }
  0x1c   :  { %315 = vmatpush3.msra.mxu0 %v89_v10  ;;  %347 = vmatprep.subr.mxu1 %v440_v2 }
  0x1d   :  { %316 = vmatprep.subr.mxu0 %v440_v2  ;;  %348 = vmatpush3.msra.mxu1 %v177_v17 }
  0x1e   :  { %317 = vmatpush3.msra.mxu0 %v88_v11  ;;  %349 = vmatprep.subr.mxu1 %v440_v2 }
  0x1f   :  { %318 = vmatprep.subr.mxu0 %v440_v2  ;;  %350 = vmatpush3.msra.mxu1 %v176_v19 }
  0x20   :  { %319 = vmatpush3.msra.mxu0 %v87_v14  ;;  %351 = vmatprep.subr.mxu1 %v440_v2 }
  0x21   :  { %320 = vmatprep.subr.mxu0 %v440_v2  ;;  %352 = vmatpush3.msra.mxu1 %v175_v21 }
  0x22   :  { %321 = vmatpush3.msra.mxu0 %v86_v16  ;;  %353 = vmatprep.subr.mxu1 %v440_v2 }
  0x23   :  { %322 = vmatprep.subr.mxu0 %v440_v2  ;;  %354 = vmatpush3.msra.mxu1 %v174_v23 }
  0x24   :  { %323 = vmatpush3.msra.mxu0 %v85_v18  ;;  %355 = vmatprep.subr.mxu1 %v440_v2 }
  0x25   :  { %324 = vmatprep.subr.mxu0 %v440_v2  ;;  %356 = vmatpush3.msra.mxu1 %v173_v25 }
  0x26   :  { %325 = vmatpush3.msra.mxu0 %v84_v20  ;;  %357 = vmatprep.subr.mxu1 %v440_v2 }
  0x27   :  { %326 = vmatprep.subr.mxu0 %v440_v2  ;;  %358 = vmatpush3.msra.mxu1 %v172_v27 }
  0x28   :  { %327 = vmatpush3.msra.mxu0 %v83_v22  ;;  %359 = vmatprep.subr.mxu1 %v440_v2 }
  0x29   :  { %328 = vmatprep.subr.mxu0 %v440_v2  ;;  %360 = vmatpush3.msra.mxu1 %v171_v29 }
  0x2a   :  { %329 = vmatpush3.msra.mxu0 %v82_v24  ;;  %361 = vmatprep.subr.mxu1 %v440_v2 }
  0x2b   :  { %330 = vmatprep.subr.mxu0 %v440_v2  ;;  %362 = vmatpush3.msra.mxu1 %v170_v31 }
  0x2c   :  { %331 = vmatpush3.msra.mxu0 %v81_v26  ;;  %363 = vmatprep.subr.mxu1 %v440_v2 }
  0x2d   :  { %332 = vmatprep.subr.mxu0 %v440_v2  ;;  %364 = vmatpush3.msra.mxu1 %v169_v33 }
  0x2e   :  { %333 = vmatpush3.msra.mxu0 %v80_v28  ;;  %365 = vmatprep.subr.mxu1 %v440_v2 }
  0x2f   :  { %334 = vmatprep.subr.mxu0 %v440_v2  ;;  %366 = vmatpush3.msra.mxu1 %v168_v34 }
  0x30   :  { %335 = vmatpush3.msra.mxu0 %v79_v30  ;;  %367 = vmatprep.subr.mxu1 %v440_v2 }
  0x31   :  { %336 = vmatprep.subr.mxu0 %v440_v2  ;;  %368 = vmatpush3.msra.mxu1 %v167_v35 }
  0x32   :  { %337 = vmatpush3.msra.mxu0 %v78_v32  ;;  %369 = vmatprep.subr.mxu1 %v440_v2 }
  0x33   :  { %370 = vmatpush3.msra.mxu1 %v166_v54 }
  0x34   :  { %371 = vmatprep.subr.mxu1 %v440_v2 }
  0x35   :  { %372 = vmatpush3.msra.mxu1 %v165_v55 }
  0x8c   :  { %v32_v37 = vpop.permute.xlu0 %31  ;;  %v58_v38 = vpop.permute.xlu1 %57 }
  0x8d   :  { %v38_v39 = vmul.f32 %v267_v36, %v32_v37  ;;  %v64_v48 = vmul.f32 %v270_v42, %v58_v38 }
  0x8f   :  { %v43_v46 = vadd.f32 %v268_v40, %v38_v39 }
  0x91   :  { %v47_v43 = vpop.permute.xlu0 %46  ;;  %v69_v45 = vpop.permute.xlu1 %68 }
  0x92   :  { %v53_v47 = vmul.f32 %v269_v41, %v47_v43  ;;  %v75_v50 = vmul.f32 %v271_v44, %v69_v45 }
  0x94   :  { %v54_v49 = vadd.f32 %v53_v47, %v43_v46 }
  0x96   :  { %v65_v51 = vadd.f32 %v64_v48, %v54_v49 }
  0x98   :  { %v76_v52 = vadd.f32 %v75_v50, %v65_v51 }
  0x9a   :  { %v77_v53 = vmax.f32 %v76_v52, 0.0 }
  0x9c   :  { %339 = vmatmul.mubr.f32.vlgmr.msra.gmra.mxu0 %v77_v53 }
 0x15c   :  { %v160_v56 = vpop.f32.mrf.mxu0 }
 0x15d   :  { %v164_v57 = vmax.f32 %v160_v56, 0.0 }
 0x15e   :  { %v340_v58 = vpop.f32.mrf.mxu0 }
 0x15f   :  { %374 = vmatmul.mubr.f32.vlgmr.msra.gmra.mxu1 %v164_v57 }
 0x21f   :  { %v247_v59 = vpop.f32.mrf.mxu1 }
 0x220   :  { %251 = vst [vmem:[#allocation5] sm:$0xff] %v247_v59 }
 0x221   :  { %v375_v60 = vpop.f32.mrf.mxu1 }
 0x222   :  { %422 = shalt.err (!%p419_p9)
}
 0x223   :  { %261 = dma.vmem_to_hbm [thread:$0]  %s259_s1, 128, %s505_s2, [#allocation4]  }
 0x224   :  { %433 = dma.done.wait [#allocation4], 128  }
 0x225   :  { %434 = vsyncadd [#allocation4], 4294967168 }
 0x226   :  { %265 = vsyncpa [#allocation3], 1 }
 0x227   :  { %266 = vsyncpa [#allocation4], 1 }

</bundles_post_ra>
